<compile_context>
chip_gen: v6e
topology: v6e:2x2x1
jax: 0.10.0
libtpu: 0.0.40
codegen_flags: <defaults>
</compile_context>

<pallas_src>
import jax
import jax.numpy as jnp
from jax.experimental import pallas as pl
from jax.experimental.pallas import tpu as pltpu


def bert_cls_kernel(x_ref, num_bias_ref, wp_ref, params_ref, out_ref):
    """Fused BERT pooler + classification head.

    x_ref        : [B, H] f32   CLS-token final hidden state
    num_bias_ref : [1, B] f32   numeric @ w_fc[H:] + b_fc (per-row bias, lane-dense)
    wp_ref       : [H, H] bf16  pooler dense weight (in x out)
    params_ref   : [2, H] f32   row 0 = pooler bias, row 1 = fc weight rows
                                for the pooled-text features
    out_ref      : [1, B] f32   sigmoid output, batch in lanes
    """
    b_pool = params_ref[0:1, :]                                    # [1, H]
    w_text = params_ref[1:2, :]                                    # [1, H]

    # ---- BERT pooler: tanh(cls @ W_pool + b_pool) --------------------------
    # f32 activations x bf16 weight (widened in VMEM), f32 accumulation.
    pooled = jnp.tanh(
        jnp.dot(x_ref[...], wp_ref[...].astype(jnp.float32),
                preferred_element_type=jnp.float32) + b_pool)      # [B, H] f32

    # ---- dropout(p=0.3): identity in eval mode ------------------------------
    # ---- fc(concat([pooled, numeric])) with out_features == 1 --------------
    # Computed as the exact split  w_text · pooled^T  +  (numeric-branch bias).
    # Contracting w_text [1,H] against pooled [B,H] on H yields a lane-dense
    # [1, B] result directly (standard q@k^T-style dot_general): no XLU
    # cross-lane reduce and no masked last-dim-1 stores.
    logits = jax.lax.dot_general(
        w_text, pooled,
        dimension_numbers=(((1,), (1,)), ((), ())),
        preferred_element_type=jnp.float32) + num_bias_ref[...]    # [1, B]

    out_ref[...] = jax.nn.sigmoid(logits)


def prepare_bert_cls_params(w_pool, b_pool, w_fc, b_fc):
    """Model-load-time parameter preparation (run ONCE, not per forward).

    Returns (wp_bf16 [H,H], params [2,H] f32, w_num [N] f32, b_fc scalar f32).
    """
    H = w_pool.shape[0]
    assert w_pool.shape == (H, H)
    assert w_fc.shape[1] == 1 and w_fc.shape[0] >= H

    wp_bf16 = w_pool.astype(jnp.bfloat16)                          # [H, H]
    params = jnp.stack(
        [b_pool.astype(jnp.float32),                               # pooler bias
         w_fc[:H, 0].astype(jnp.float32)],                         # fc text rows
        axis=0)                                                    # [2, H]
    w_num = w_fc[H:, 0].astype(jnp.float32)                        # [N]
    b_fc_scalar = b_fc.reshape(()).astype(jnp.float32)
    return wp_bf16, params, w_num, b_fc_scalar


def bert_cls_forward(cls_hidden, numeric, prepared, *, training=False):
    """Per-call wrapper: one tiny numeric-branch op + a single pallas_call."""
    # TODO(synk): dropout(0.3) only valid as identity in eval/inference mode.
    assert not training, "dropout(0.3) is only implemented for eval mode"

    wp_bf16, params, w_num, b_fc = prepared
    B, H = cls_hidden.shape
    Bn, N = numeric.shape
    assert Bn == B and w_num.shape == (N,) and wp_bf16.shape == (H, H)

    # Numeric branch of the fc: trivial [B,N]·[N] contraction + bias, emitted
    # lane-dense as [1, B] so the kernel adds it directly to the logits row.
    num_bias = (jnp.einsum("bn,n->b", numeric.astype(jnp.float32), w_num)
                + b_fc)[None, :]                                   # [1, B]

    x = cls_hidden.astype(jnp.float32)

    vmem = pl.BlockSpec(memory_space=pltpu.MemorySpace.VMEM)
    cost = pl.CostEstimate(
        flops=2 * B * H * H + 2 * B * H,            # pooler matmul + fc dot
        transcendentals=B * H + B,                  # tanh + sigmoid
        bytes_accessed=(B * H * 4 + H * H * 2 + 2 * H * 4 + B * 4 + B * 4),
    )

    out_row = pl.pallas_call(
        bert_cls_kernel,
        out_shape=jax.ShapeDtypeStruct((1, B), jnp.float32),
        in_specs=[vmem, vmem, vmem, vmem],
        out_specs=vmem,
        cost_estimate=cost,
    )(x, num_bias, wp_bf16, params)

    # (1, B) and (B, 1) share the same row-major order: metadata-only reshape
    # to preserve the PyTorch module's [B, 1] output shape.
    return out_row.reshape(B, 1)


def reference_forward(cls_hidden, numeric, w_pool, b_pool, w_fc, b_fc):
    """Pure-JAX f32 reference (same math as the PyTorch head in eval mode)."""
    pooled = jnp.tanh(cls_hidden @ w_pool + b_pool)                # pooler_output
    features = jnp.concatenate([pooled, numeric], axis=1)
    logits = features @ w_fc + b_fc
    return jax.nn.sigmoid(logits)


if __name__ == "__main__":
    # Shapes consistent with the module: pooler hidden size 256
    # (fc = Linear(256 + numeric_size, 1)); small batch / numeric_size.
    B = 8            # batch
    H = 256          # Longformer hidden size -> pooler_output dim
    N = 8            # numeric_size

    key = jax.random.PRNGKey(0)
    k1, k2, k3, k4, k5, k6 = jax.random.split(key, 6)

    # "Encoder output" stand-in: CLS-token final hidden state.
    cls_hidden = jax.random.normal(k1, (B, H), dtype=jnp.float32)
    numeric = jax.random.normal(k2, (B, N), dtype=jnp.float32)

    # Deterministic synthetic parameters (shapes from the module definition).
    w_pool = jax.random.normal(k3, (H, H), dtype=jnp.float32) * 0.02
    b_pool = jax.random.normal(k4, (H,), dtype=jnp.float32) * 0.02
    w_fc = jax.random.normal(k5, (H + N, 1), dtype=jnp.float32) * 0.02
    b_fc = jax.random.normal(k6, (1,), dtype=jnp.float32) * 0.02

    # Model-load-time prep (hoisted out of the per-call path).
    prepared = prepare_bert_cls_params(w_pool, b_pool, w_fc, b_fc)

    out = bert_cls_forward(cls_hidden, numeric, prepared)
    out = jax.block_until_ready(out)

    ref = reference_forward(cls_hidden, numeric, w_pool, b_pool, w_fc, b_fc)
    assert out.shape == (B, 1)
    # Only W_pool is bf16 (activations stay f32, f32 accumulation), so the
    # error vs. the f32 reference is O(1e-4) on the sigmoid output.
    assert jnp.allclose(out, ref, atol=5e-3, rtol=5e-3), "mismatch vs reference"

    print("KERNEL_OK")
</pallas_src>

<mosaic_0001>
module attributes {stable_mosaic.version = 11 : i64} {
  func.func @bert_cls_kernel(%arg0: memref<8x256xf32, #tpu.memory_space<vmem>>, %arg1: memref<1x8xf32, #tpu.memory_space<vmem>>, %arg2: memref<256x256xbf16, #tpu.memory_space<vmem>>, %arg3: memref<2x256xf32, #tpu.memory_space<vmem>>, %arg4: memref<1x8xf32, #tpu.memory_space<vmem>>) attributes {dimension_semantics = [], scalar_prefetch = 0 : i64, scratch_operands = 0 : i64, tpu.core_type = #tpu.core_type<tc>} {
    %c0 = arith.constant 0 : index
    %c0_0 = arith.constant 0 : index
    %0 = vector.load %arg3[%c0, %c0_0] : memref<2x256xf32, #tpu.memory_space<vmem>>, vector<1x256xf32>
    %c1 = arith.constant 1 : index
    %c0_1 = arith.constant 0 : index
    %1 = vector.load %arg3[%c1, %c0_1] : memref<2x256xf32, #tpu.memory_space<vmem>>, vector<1x256xf32>
    %c0_2 = arith.constant 0 : index
    %c0_3 = arith.constant 0 : index
    %2 = vector.load %arg0[%c0_2, %c0_3] : memref<8x256xf32, #tpu.memory_space<vmem>>, vector<8x256xf32>
    %c0_4 = arith.constant 0 : index
    %c0_5 = arith.constant 0 : index
    %3 = vector.load %arg2[%c0_4, %c0_5] : memref<256x256xbf16, #tpu.memory_space<vmem>>, vector<256x256xbf16>
    %4 = arith.extf %3 : vector<256x256xbf16> to vector<256x256xf32>
    %cst = arith.constant dense<0.000000e+00> : vector<8x256xf32>
    %5 = tpu.matmul %2, %4, %cst {dimension_numbers = #tpu.dot_dimension_numbers<[1], [0], [0], [1], [0, 0, 1, 1], [], []>} : vector<8x256xf32>, vector<256x256xf32>, vector<8x256xf32> -> vector<8x256xf32>
    %6 = vector.broadcast %0 : vector<1x256xf32> to vector<8x256xf32>
    %7 = arith.addf %5, %6 : vector<8x256xf32>
    %8 = math.tanh %7 : vector<8x256xf32>
    %cst_6 = arith.constant dense<0.000000e+00> : vector<1x8xf32>
    %9 = tpu.matmul %1, %8, %cst_6 {dimension_numbers = #tpu.dot_dimension_numbers<[1], [1], [0], [0], [0, 0, 1, 0], [], []>} : vector<1x256xf32>, vector<8x256xf32>, vector<1x8xf32> -> vector<1x8xf32>
    %c0_7 = arith.constant 0 : index
    %c0_8 = arith.constant 0 : index
    %10 = vector.load %arg1[%c0_7, %c0_8] : memref<1x8xf32, #tpu.memory_space<vmem>>, vector<1x8xf32>
    %11 = arith.addf %9, %10 : vector<1x8xf32>
    %12 = arith.negf %11 : vector<1x8xf32>
    %13 = math.exp %12 : vector<1x8xf32>
    %cst_9 = arith.constant 1.000000e+00 : f32
    %14 = vector.broadcast %cst_9 : f32 to vector<1x8xf32>
    %15 = arith.addf %14, %13 : vector<1x8xf32>
    %16 = arith.divf %14, %15 : vector<1x8xf32>
    %c0_10 = arith.constant 0 : index
    %c0_11 = arith.constant 0 : index
    %17 = vector.load %arg4[%c0_10, %c0_11] : memref<1x8xf32, #tpu.memory_space<vmem>>, vector<1x8xf32>
    tpu.vector_store %arg4[%c0_10, %c0_11], %16 {strides = array<i32>} : memref<1x8xf32, #tpu.memory_space<vmem>>, vector<1x8xf32>,
    return
  }
}

</mosaic_0001>

<bundles_post_ra>
// kernel: tpu_custom_call.1
= control target key start
LH: loop header
LB: loop body
LE: loop exit
PB: predicated region body
PF: predicated region fallthrough
CT: control target
= control target key end

     0   :  { %9 = vsyncpa [#allocation3], 0  ;;  %s464_s0 = inlined_call_operand.hbm [shape: f32[8,256], index: 0, kind: input, shape index: {}]   ;;  %s465_s1 = inlined_call_operand.vmem [shape: f32[1,8], index: 1, kind: input, shape index: {}]   ;;  %s466_s2 = inlined_call_operand.hbm [shape: bf16[256,256], index: 2, kind: input, shape index: {}]   ;;  %s467_s3 = inlined_call_operand.vmem [shape: f32[2,256], index: 3, kind: input, shape index: {}]   ;;  %s468_s4 = inlined_call_operand.hbm [shape: f32[1,8], index: 4, kind: output, shape index: {}]  }
   0x1   :  { %10 = vsyncpa [#allocation6], 0 }
   0x2   :  { %11 = vsyncpa [#allocation4], 0  ;;  %s416_s15 = smov [#allocation2]   ;;  %s417_s17 = smov [#allocation5]  }
   0x3   :  { %s18_s16 = sshll.u32 %s416_s15, 4  ;;  %s29_s18 = sshll.u32 %s417_s17, 4  ;;  %s19_s16 = int_to_ptr.vmem [resolvable:$true] %s18_s16  ;;  %s30_s18 = int_to_ptr.vmem [resolvable:$true] %s29_s18 }
   0x4   :  { %s358_s19 = scalar_lea.vmem %s19_s16, 256  ;;  %p363_p1 = scmp.lt.s32.totalorder %s19_s16, %s19_s16 }
   0x5   :  { %p359_p0 = scmp.ne.s32.totalorder %s19_s16, %s358_s19  ;;  %p364_p2 = scmp.lt.s32.totalorder %s358_s19, %s358_s19 }
   0x7   :  { %p365_p3 = por %p364_p2, %p363_p1 }
   0x9   :  { %p366_p4 = pnand %p365_p3, %p359_p0 }
   0xb   :  { %369 = shalt.err (!%p366_p4)
}
   0xc   :  { %21 = dma.hbm_to_vmem [thread:$0]  %s464_s0, 256, %s19_s16, [#allocation3]  }
   0xd   :  { %s378_s22 = scalar_lea.vmem %s30_s18, 4096  ;;  %p383_p6 = scmp.lt.s32.totalorder %s30_s18, %s30_s18 }
   0xe   :  { %p379_p5 = scmp.ne.s32.totalorder %s30_s18, %s378_s22  ;;  %p384_p7 = scmp.lt.s32.totalorder %s378_s22, %s378_s22 }
  0x10   :  { %p385_p8 = por %p384_p7, %p383_p6 }
  0x12   :  { %p386_p9 = pnand %p385_p8, %p379_p5 }
  0x14   :  { %389 = shalt.err (!%p386_p9)
}
  0x15   :  { %s418_s23 = smov 128   ;;  %s419_s24 = smov 8  }
  0x16   :  { %35 = dma.hbm_to_vmem [thread:$0]  %s466_s2, 4096, %s30_s18, [#allocation6], %s418_s23, %s418_s23, %s419_s24  }
  0x17   :  { %410 = dma.done.wait [#allocation3], 256  }
  0x18   :  { %411 = vsyncadd [#allocation3], 4294967040 }
  0x19   :  { %412 = dma.done.wait [#allocation6], 4096  }
  0x1a   :  { %413 = vsyncadd [#allocation6], 4294963200  ;;  %v64_v0 = vld [vmem:[#allocation5 + $0x78] sm:$0xff]  ;;  %v63_v1 = vld [vmem:[#allocation5 + $0x70] sm:$0xff]  ;;  %vm317_vm0 = vcmask 57344  }
  0x1b   :  { %v62_v2 = vld [vmem:[#allocation5 + $0x68] sm:$0xff]  ;;  %v112_v3 = vunpack.c.h.bf16 %v64_v0  ;;  %v111_v4 = vunpack.c.l.bf16 %v64_v0  ;;  %v110_v5 = vunpack.c.h.bf16 %v63_v1  ;;  %v109_v6 = vunpack.c.l.bf16 %v63_v1  ;;  %v61_v7 = vld [vmem:[#allocation5 + $0x60] sm:$0xff]  ;;  %v60_v10 = vld [vmem:[#allocation5 + $0x58] sm:$0xff] }
  0x1c   :  { %v108_v8 = vunpack.c.h.bf16 %v62_v2  ;;  %v107_v9 = vunpack.c.l.bf16 %v62_v2  ;;  %v106_v11 = vunpack.c.h.bf16 %v61_v7  ;;  %v105_v12 = vunpack.c.l.bf16 %v61_v7  ;;  %v59_v13 = vld [vmem:[#allocation5 + $0x50] sm:$0xff]  ;;  %v58_v16 = vld [vmem:[#allocation5 + $0x48] sm:$0xff]  ;;  %v57_v19 = vld [vmem:[#allocation5 + $0x40] sm:$0xff] }
  0x1d   :  { %156 = vmatprep.subr.mxu0 %v112_v3  ;;  %v104_v14 = vunpack.c.h.bf16 %v60_v10  ;;  %v103_v15 = vunpack.c.l.bf16 %v60_v10  ;;  %v102_v17 = vunpack.c.h.bf16 %v59_v13  ;;  %v101_v18 = vunpack.c.l.bf16 %v59_v13  ;;  %v48_v20 = vld [vmem:[#allocation2 + $0x8] sm:$0xff]  ;;  %v55_v26 = vld [vmem:[#allocation5 + $0x30] sm:$0xff]  ;;  %v54_v29 = vld [vmem:[#allocation5 + $0x28] sm:$0xff] }
  0x1e   :  { %157 = vmatpush1.msra.mxu0 %v111_v4  ;;  %v100_v21 = vunpack.c.h.bf16 %v58_v16  ;;  %220 = vmatprep.mubr.f32.mxu0 %v48_v20  ;;  %v99_v22 = vunpack.c.l.bf16 %v58_v16  ;;  %v56_v23 = vld [vmem:[#allocation5 + $0x38] sm:$0xff]  ;;  %v98_v24 = vunpack.c.h.bf16 %v57_v19  ;;  %v97_v25 = vunpack.c.l.bf16 %v57_v19  ;;  %v53_v32 = vld [vmem:[#allocation5 + $0x20] sm:$0xff]  ;;  %v51_v38 = vld [vmem:[#allocation5 + $0x10] sm:$0xff] }
  0x1f   :  { %158 = vmatprep.subr.mxu0 %v110_v5  ;;  %v96_v27 = vunpack.c.h.bf16 %v56_v23  ;;  %v95_v28 = vunpack.c.l.bf16 %v56_v23  ;;  %v94_v30 = vunpack.c.h.bf16 %v55_v26  ;;  %v93_v31 = vunpack.c.l.bf16 %v55_v26  ;;  %v52_v35 = vld [vmem:[#allocation5 + $0x18] sm:$0xff]  ;;  %v50_v41 = vld [vmem:[#allocation5 + $0x8] sm:$0xff]  ;;  %v49_v44 = vld [vmem:[#allocation5] sm:$0xff] }
  0x20   :  { %159 = vmatpush1.msra.mxu0 %v109_v6  ;;  %v92_v33 = vunpack.c.h.bf16 %v54_v29  ;;  %v91_v34 = vunpack.c.l.bf16 %v54_v29  ;;  %v90_v36 = vunpack.c.h.bf16 %v53_v32  ;;  %v89_v37 = vunpack.c.l.bf16 %v53_v32  ;;  %v80_v47 = vld [vmem:[#allocation5 + $0xf8] sm:$0xff]  ;;  %v79_v50 = vld [vmem:[#allocation5 + $0xf0] sm:$0xff]  ;;  %v78_v53 = vld [vmem:[#allocation5 + $0xe8] sm:$0xff] }
  0x21   :  { %160 = vmatprep.subr.mxu0 %v108_v8  ;;  %v88_v39 = vunpack.c.h.bf16 %v52_v35  ;;  %v87_v40 = vunpack.c.l.bf16 %v52_v35  ;;  %v86_v42 = vunpack.c.h.bf16 %v51_v38  ;;  %v85_v43 = vunpack.c.l.bf16 %v51_v38  ;;  %v77_v56 = vld [vmem:[#allocation5 + $0xe0] sm:$0xff]  ;;  %v76_v59 = vld [vmem:[#allocation5 + $0xd8] sm:$0xff]  ;;  %v75_v62 = vld [vmem:[#allocation5 + $0xd0] sm:$0xff] }
  0x22   :  { %161 = vmatpush1.msra.mxu0 %v107_v9  ;;  %v84_v45 = vunpack.c.h.bf16 %v50_v41  ;;  %v83_v46 = vunpack.c.l.bf16 %v50_v41  ;;  %v82_v48 = vunpack.c.h.bf16 %v49_v44  ;;  %v81_v49 = vunpack.c.l.bf16 %v49_v44  ;;  %v74_v1 = vld [vmem:[#allocation5 + $0xc8] sm:$0xff]  ;;  %v73_v4 = vld [vmem:[#allocation5 + $0xc0] sm:$0xff]  ;;  %v72_v7 = vld [vmem:[#allocation5 + $0xb8] sm:$0xff] }
  0x23   :  { %162 = vmatprep.subr.mxu0 %v106_v11  ;;  %v144_v51 = vunpack.c.h.bf16 %v80_v47  ;;  %v143_v52 = vunpack.c.l.bf16 %v80_v47  ;;  %v142_v54 = vunpack.c.h.bf16 %v79_v50  ;;  %v141_v55 = vunpack.c.l.bf16 %v79_v50  ;;  %v71_v10 = vld [vmem:[#allocation5 + $0xb0] sm:$0xff]  ;;  %v70_v13 = vld [vmem:[#allocation5 + $0xa8] sm:$0xff]  ;;  %v69_v16 = vld [vmem:[#allocation5 + $0xa0] sm:$0xff] }
  0x24   :  { %163 = vmatpush1.msra.mxu0 %v105_v12  ;;  %v140_v57 = vunpack.c.h.bf16 %v78_v53  ;;  %v139_v58 = vunpack.c.l.bf16 %v78_v53  ;;  %v138_v60 = vunpack.c.h.bf16 %v77_v56  ;;  %v137_v61 = vunpack.c.l.bf16 %v77_v56  ;;  %v68_v19 = vld [vmem:[#allocation5 + $0x98] sm:$0xff]  ;;  %v229_v50 = vld [vmem:[%s465_s1] sm:$0x1] }
  0x25   :  { %164 = vmatprep.subr.mxu0 %v104_v14  ;;  %v136_v63 = vunpack.c.h.bf16 %v76_v59  ;;  %v135_v0 = vunpack.c.l.bf16 %v76_v59  ;;  %v134_v2 = vunpack.c.h.bf16 %v75_v62  ;;  %v133_v3 = vunpack.c.l.bf16 %v75_v62 }
  0x26   :  { %165 = vmatpush1.msra.mxu0 %v103_v15  ;;  %v132_v5 = vunpack.c.h.bf16 %v74_v1  ;;  %v131_v6 = vunpack.c.l.bf16 %v74_v1  ;;  %v130_v8 = vunpack.c.h.bf16 %v73_v4  ;;  %v129_v9 = vunpack.c.l.bf16 %v73_v4 }
  0x27   :  { %166 = vmatprep.subr.mxu0 %v102_v17  ;;  %v128_v11 = vunpack.c.h.bf16 %v72_v7  ;;  %v127_v12 = vunpack.c.l.bf16 %v72_v7  ;;  %v126_v14 = vunpack.c.h.bf16 %v71_v10  ;;  %v125_v15 = vunpack.c.l.bf16 %v71_v10 }
  0x28   :  { %167 = vmatpush1.msra.mxu0 %v101_v18  ;;  %v124_v17 = vunpack.c.h.bf16 %v70_v13  ;;  %v123_v18 = vunpack.c.l.bf16 %v70_v13  ;;  %v122_v20 = vunpack.c.h.bf16 %v69_v16  ;;  %v120_v23 = vunpack.c.h.bf16 %v68_v19 }
  0x29   :  { %168 = vmatprep.subr.mxu0 %v100_v21  ;;  %v121_v21 = vunpack.c.l.bf16 %v69_v16 }
  0x2a   :  { %169 = vmatpush1.msra.mxu0 %v99_v22  ;;  %v67_v22 = vld [vmem:[#allocation5 + $0x90] sm:$0xff] }
  0x2b   :  { %170 = vmatprep.subr.mxu0 %v98_v24  ;;  %v119_v24 = vunpack.c.l.bf16 %v68_v19  ;;  %v118_v26 = vunpack.c.h.bf16 %v67_v22 }
  0x2c   :  { %171 = vmatpush1.msra.mxu0 %v97_v25  ;;  %v66_v25 = vld [vmem:[#allocation5 + $0x88] sm:$0xff] }
  0x2d   :  { %172 = vmatprep.subr.mxu0 %v96_v27  ;;  %v117_v27 = vunpack.c.l.bf16 %v67_v22  ;;  %v116_v29 = vunpack.c.h.bf16 %v66_v25 }
  0x2e   :  { %173 = vmatpush1.msra.mxu0 %v95_v28  ;;  %v65_v28 = vld [vmem:[#allocation5 + $0x80] sm:$0xff] }
  0x2f   :  { %174 = vmatprep.subr.mxu0 %v94_v30  ;;  %v115_v30 = vunpack.c.l.bf16 %v66_v25  ;;  %v113_v32 = vunpack.c.l.bf16 %v65_v28 }
  0x30   :  { %175 = vmatpush1.msra.mxu0 %v93_v31  ;;  %v114_v31 = vunpack.c.h.bf16 %v65_v28 }
  0x31   :  { %176 = vmatprep.subr.mxu0 %v92_v33  ;;  %v47_v33 = vld [vmem:[#allocation2] sm:$0xff] }
  0x32   :  { %177 = vmatpush1.msra.mxu0 %v91_v34  ;;  %v146_v34 = vlaneseq }
  0x33   :  { %178 = vmatprep.subr.mxu0 %v90_v36 }
  0x34   :  { %179 = vmatpush1.msra.mxu0 %v89_v37  ;;  %v147_v35 = vshrl.u32 %v146_v34, 7  ;;  %v335_v37 = vld [vmem:[%s467_s3 + $0x1] ss:$2 sm:$0x3] }
  0x35   :  { %180 = vmatprep.subr.mxu0 %v88_v39 }
  0x36   :  { %181 = vmatpush1.msra.mxu0 %v87_v40  ;;  %v152_v36 = vsub.s32 1, %v147_v35  ;;  %v148_v39 = vsub.s32 0, %v147_v35  ;;  %v44_v40 = vld [vmem:[%s467_s3] ss:$2 sm:$0x3]  ;;  %s420_s3 = smov [#allocation7]  }
  0x37   :  { %182 = vmatprep.subr.mxu0 %v86_v42  ;;  %s325_s5 = sshll.u32 %s420_s3, 4  ;;  %s326_s5 = int_to_ptr.vmem [resolvable:$true] %s325_s5 }
  0x38   :  { %183 = vmatpush1.msra.mxu0 %v85_v43  ;;  %v238_v38 = vrot.slane %v335_v37, %v152_v36  ;;  %v149_v41 = vrot.slane %v44_v40, %v148_v39  ;;  %v153_v42 = vrot.slane %v44_v40, %v152_v36  ;;  %s390_s6 = scalar_lea.vmem %s326_s5, 16  ;;  %s394_s7 = scalar_lea.vmem %s326_s5, 32 }
  0x39   :  { %184 = vmatprep.subr.mxu0 %v84_v45  ;;  %p391_p10 = scmp.ne.s32.totalorder %s326_s5, %s390_s6  ;;  %p395_p11 = scmp.lt.s32.totalorder %s326_s5, %s326_s5 }
  0x3a   :  { %185 = vmatpush1.msra.mxu0 %v83_v46  ;;  %305 = vmatprep.mubr.f32.mxu1 %v238_v38  ;;  %p396_p12 = scmp.lt.s32.totalorder %s394_s7, %s390_s6 }
  0x3b   :  { %186 = vmatprep.subr.mxu0 %v82_v48 }
  0x3c   :  { %187 = vmatpush1.msra.mxu0 %v81_v49  ;;  %v234_v49 = vrot.slane %v335_v37, %v148_v39  ;;  %p397_p13 = por %p396_p12, %p395_p11 }
  0x3d   :  { %188 = vmatprep.subr.mxu0 %v144_v51 }
  0x3e   :  { %189 = vmatpush2.msra.mxu0 %v143_v52  ;;  %p398_p0 = pnand %p397_p13, %p391_p10 }
  0x3f   :  { %190 = vmatprep.subr.mxu0 %v142_v54 }
  0x40   :  { %191 = vmatpush2.msra.mxu0 %v141_v55 }
  0x41   :  { %192 = vmatprep.subr.mxu0 %v140_v57 }
  0x42   :  { %193 = vmatpush2.msra.mxu0 %v139_v58 }
  0x43   :  { %194 = vmatprep.subr.mxu0 %v138_v60 }
  0x44   :  { %195 = vmatpush2.msra.mxu0 %v137_v61 }
  0x45   :  { %196 = vmatprep.subr.mxu0 %v136_v63 }
  0x46   :  { %197 = vmatpush2.msra.mxu0 %v135_v0 }
  0x47   :  { %198 = vmatprep.subr.mxu0 %v134_v2 }
  0x48   :  { %199 = vmatpush2.msra.mxu0 %v133_v3 }
  0x49   :  { %200 = vmatprep.subr.mxu0 %v132_v5 }
  0x4a   :  { %201 = vmatpush2.msra.mxu0 %v131_v6 }
  0x4b   :  { %202 = vmatprep.subr.mxu0 %v130_v8 }
  0x4c   :  { %203 = vmatpush2.msra.mxu0 %v129_v9 }
  0x4d   :  { %204 = vmatprep.subr.mxu0 %v128_v11 }
  0x4e   :  { %205 = vmatpush2.msra.mxu0 %v127_v12 }
  0x4f   :  { %206 = vmatprep.subr.mxu0 %v126_v14 }
  0x50   :  { %207 = vmatpush2.msra.mxu0 %v125_v15 }
  0x51   :  { %208 = vmatprep.subr.mxu0 %v124_v17 }
  0x52   :  { %209 = vmatpush2.msra.mxu0 %v123_v18 }
  0x53   :  { %210 = vmatprep.subr.mxu0 %v122_v20 }
  0x54   :  { %211 = vmatpush2.msra.mxu0 %v121_v21 }
  0x55   :  { %212 = vmatprep.subr.mxu0 %v120_v23 }
  0x56   :  { %213 = vmatpush2.msra.mxu0 %v119_v24 }
  0x57   :  { %214 = vmatprep.subr.mxu0 %v118_v26 }
  0x58   :  { %215 = vmatpush2.msra.mxu0 %v117_v27 }
  0x59   :  { %216 = vmatprep.subr.mxu0 %v116_v29 }
  0x5a   :  { %217 = vmatpush2.msra.mxu0 %v115_v30 }
  0x5b   :  { %218 = vmatprep.subr.mxu0 %v114_v31 }
  0x5c   :  { %219 = vmatpush2.msra.mxu0 %v113_v32 }
  0x5d   :  { %221 = vmatmul.mubr.f32.vlgmr.msra.gmra.mxu0 %v47_v33 }
 0x11d   :  { %v222_v43 = vpop.f32.mrf.mxu0 }
 0x11e   :  { %v223_v44 = vadd.f32 %v222_v43, %v149_v41 }
 0x11f   :  { %v224_v45 = vpop.f32.mrf.mxu0 }
 0x120   :  { %v225_v46 = vadd.f32 %v224_v45, %v153_v42 }
 0x122   :  { %342 = vtanh.f32 %v225_v46 }
 0x123   :  { %344 = vtanh.f32 %v223_v44 }
 0x12f   :  { %v343_v47 = vpop.eup %342 }
 0x130   :  { %v345_v48 = vpop.eup %344  ;;  %271 = vmatprep.subr.mxu1 %v343_v47 }
 0x131   :  { %272 = vmatpush1.xpose.msra.mxu1 %v345_v48 }
 0x134   :  { %306 = vmatmul.mubr.f32.vlgmr.msra.gmra.mxu1 %v234_v49 }
 0x1f4   :  { %v307_v51 = vpop.f32.mrf.mxu1 }
 0x1f5   :  { %v308_v52 = vadd.f32 %v307_v51, %v229_v50 }
 0x1f6   :  { %v309_v53 = vpop.f32.mrf.mxu1 }
 0x1f7   :  { %v336_v54 = vmul.f32 -1.442695, %v308_v52 }
 0x1f9   :  { %346 = vpow2.f32 %v336_v54 }
 0x206   :  { %v347_v55 = vpop.eup %346 }
 0x207   :  { %v314_v56 = vadd.f32 1.0, %v347_v55 }
 0x209   :  { %348 = vrcp.f32 %v314_v56 }
 0x216   :  { %v349_v57 = vpop.eup %348 }
 0x217   :  { %318 = vst.msk [vmem:[#allocation7] sm:$0x1] %vm317_vm0, %v349_v57 }
 0x218   :  { %401 = shalt.err (!%p398_p0)
}
 0x219   :  { %328 = dma.vmem_to_hbm [thread:$0]  %s326_s5, 16, %s468_s4, [#allocation4]  }
 0x21a   :  { %414 = dma.done.wait [#allocation4], 16  }
 0x21b   :  { %415 = vsyncadd [#allocation4], 4294967280 }
 0x21c   :  { %332 = vsyncpa [#allocation3], 1 }
 0x21d   :  { %333 = vsyncpa [#allocation6], 1 }
 0x21e   :  { %334 = vsyncpa [#allocation4], 1 }

</bundles_post_ra>
